<compile_context>
chip_gen: v5e
topology: v5e:2x2
jax: 0.10.0
libtpu: 0.0.40
codegen_flags: <defaults>
</compile_context>

<pallas_src>
import jax
import jax.numpy as jnp
from jax.experimental import pallas as pl
from jax.experimental.pallas import tpu as pltpu


_TILE_BYTES = 4 * 1024 * 1024      # ~4 MiB per tile buffer
_SPLIT_BYTES = 1 * 1024 * 1024     # split into >=2 grid blocks above this (v7x megacore)
_VMEM_LIMIT = 40 * 1024 * 1024     # explicit scoped-VMEM limit (>= 4 bufs x 4 MiB + slack)
_FALLBACK_CHUNK = 64 * 1024        # lane chunk for the total % 128 != 0 fallback


def _mul_zero_kernel(x_ref, o_ref):
    # NaN/Inf-preserving multiply by zero in the input dtype (no promotion).
    o_ref[...] = x_ref[...] * jnp.zeros((), dtype=x_ref.dtype)


def _fill_zero_kernel(o_ref):
    # Fast path: store zeros, no input read at all.
    o_ref[...] = jnp.zeros(o_ref.shape, dtype=o_ref.dtype)


def _compiler_params():
    return pltpu.CompilerParams(
        dimension_semantics=("parallel",),
        vmem_limit_bytes=_VMEM_LIMIT,
    )


def _sublane_quantum(itemsize):
    # Full packed-sublane groups: f32/i32 -> 8, bf16/f16 -> 16, int8/fp8 -> 32.
    return 8 * max(1, 4 // itemsize)


def _choose_block_rows(rows, lane, itemsize):
    q = _sublane_quantum(itemsize)
    tgt = max(q, (_TILE_BYTES // (lane * itemsize)) // q * q)
    # Guarantee >= 2 grid blocks for non-tiny tensors so both of v7x's
    # TensorCores get work (harmless extra step on single-core v5e/v6e).
    if rows * lane * itemsize > _SPLIT_BYTES and rows >= 2 * q:
        half = max(q, (rows // 2) // q * q)
        tgt = min(tgt, half)
    if rows <= tgt:
        return rows            # full dim -> always a legal block shape
    return tgt                 # multiple of q; Pallas masks the partial tail


def _lane_dense_view(total):
    """Pick the largest lane width (multiple of 128) that divides `total`."""
    for cand in (2048, 1024, 512, 256, 128):
        if total % cand == 0:
            return total // cand, cand
    return None, None


def _zero_2d_call(rows, lane, dtype, block_rows, x2d=None):
    grid = (pl.cdiv(rows, block_rows),)
    out_shape = jax.ShapeDtypeStruct((rows, lane), dtype)
    spec = pl.BlockSpec((block_rows, lane), lambda i: (i, 0))
    if x2d is None:
        return pl.pallas_call(
            _fill_zero_kernel, out_shape=out_shape, grid=grid,
            in_specs=[], out_specs=spec,
            compiler_params=_compiler_params())()
    return pl.pallas_call(
        _mul_zero_kernel, out_shape=out_shape, grid=grid,
        in_specs=[spec], out_specs=spec,
        compiler_params=_compiler_params())(x2d)


def _zero_flat_call(total, dtype, xf=None):
    # total is NOT a multiple of 128: tile a (1, total) view along the lane
    # axis with bounded chunks so VMEM stays small (never one giant block).
    chunk = total if total <= _FALLBACK_CHUNK else _FALLBACK_CHUNK
    grid = (pl.cdiv(total, chunk),)
    out_shape = jax.ShapeDtypeStruct((1, total), dtype)
    spec = pl.BlockSpec((1, chunk), lambda i: (0, i))
    if xf is None:
        return pl.pallas_call(
            _fill_zero_kernel, out_shape=out_shape, grid=grid,
            in_specs=[], out_specs=spec,
            compiler_params=_compiler_params())()
    return pl.pallas_call(
        _mul_zero_kernel, out_shape=out_shape, grid=grid,
        in_specs=[spec], out_specs=spec,
        compiler_params=_compiler_params())(xf.reshape(1, total))


def _zero_nd(shape, dtype, x=None):
    total = 1
    for d in shape:
        total *= d
    if total == 0:
        return jnp.zeros(shape, dtype)
    xf = None if x is None else x.reshape(-1)
    rows, lane = _lane_dense_view(total)
    if lane is None:
        out = _zero_flat_call(total, dtype, xf)
    else:
        block_rows = _choose_block_rows(rows, lane, jnp.dtype(dtype).itemsize)
        out = _zero_2d_call(rows, lane, dtype, block_rows,
                            None if xf is None else xf.reshape(rows, lane))
    return out.reshape(shape)


def zero_forward(x, stride, exact_mul=True):
    """Pallas equivalent of Zero(stride).forward(x).  x is NCHW.

    exact_mul=True  : read x and multiply by 0 (NaN/Inf propagate exactly like
                      torch's x.mul(0.0)); 1 HBM read + 1 write.
    exact_mul=False : zero-fill only (bit-identical for finite inputs); no
                      input read -> ~2x less HBM traffic, and stride != 1
                      needs no slice pass at all.
    """
    if not exact_mul:
        if stride == 1:
            out_shape = x.shape
        else:
            out_shape = (x.shape[0], x.shape[1],
                         -(-x.shape[2] // stride), -(-x.shape[3] // stride))
        return _zero_nd(out_shape, x.dtype, x=None)

    if stride != 1:
        # TODO(synk): fold the ::stride subsample into the kernel (strided /
        # Element-mode BlockSpec for H) to cut the strict path's HBM traffic;
        # the W (lane-axis) subsample has no guaranteed Mosaic lowering
        # in-kernel, so the strict path keeps the XLA slice (exact_mul=False
        # avoids it entirely).
        x = x[:, :, ::stride, ::stride]
    return _zero_nd(x.shape, x.dtype, x=x)


if __name__ == "__main__":
    key = jax.random.PRNGKey(0)
    x = jax.random.normal(key, (2, 4, 16, 16), dtype=jnp.float32)

    # stride == 1, exact torch.mul(0.0) semantics
    y1 = jax.block_until_ready(zero_forward(x, stride=1))
    assert y1.shape == (2, 4, 16, 16) and y1.dtype == x.dtype
    assert jnp.array_equal(y1, x * 0.0)

    # stride == 2, exact semantics
    y2 = jax.block_until_ready(zero_forward(x, stride=2))
    assert y2.shape == (2, 4, 8, 8)
    assert jnp.array_equal(y2, x[:, :, ::2, ::2] * 0.0)

    # NaN propagation (torch x.mul(0.0) maps NaN -> NaN)
    x_nan = x.at[0, 0, 0, 0].set(jnp.nan)
    y_nan = jax.block_until_ready(zero_forward(x_nan, stride=1))
    assert bool(jnp.isnan(y_nan[0, 0, 0, 0]))
    assert jnp.all(y_nan.ravel()[1:] == 0.0)

    # Fast zero-fill path (no input read): identical for finite inputs.
    f1 = jax.block_until_ready(zero_forward(x, stride=1, exact_mul=False))
    assert f1.shape == x.shape and jnp.array_equal(f1, x * 0.0)
    f2 = jax.block_until_ready(zero_forward(x, stride=2, exact_mul=False))
    assert f2.shape == (2, 4, 8, 8) and jnp.all(f2 == 0.0)

    # Odd element count exercises the bounded (tiled) fallback path.
    x_odd = jax.random.normal(key, (2, 3, 5, 7), dtype=jnp.float32)
    y_odd = jax.block_until_ready(zero_forward(x_odd, stride=1))
    assert y_odd.shape == (2, 3, 5, 7) and jnp.array_equal(y_odd, x_odd * 0.0)

    # bf16 exercises dtype preservation with the packed-sublane rounding.
    x_bf16 = x.astype(jnp.bfloat16)
    y_bf16 = jax.block_until_ready(zero_forward(x_bf16, stride=1))
    assert y_bf16.dtype == jnp.bfloat16 and jnp.all(y_bf16 == 0)

    print("KERNEL_OK")
</pallas_src>

<mosaic_0001>
module attributes {stable_mosaic.version = 11 : i64} {
  func.func @_mul_zero_kernel(%arg0: i32, %arg1: memref<1x2048xf32, #tpu.memory_space<vmem>>, %arg2: memref<1x2048xf32, #tpu.memory_space<vmem>>) attributes {dimension_semantics = [#tpu.dimension_semantics<parallel>], iteration_bounds = array<i64: 1>, scalar_prefetch = 0 : i64, scratch_operands = 0 : i64, tpu.core_type = #tpu.core_type<tc>, window_params = [{transform_indices = @transform_0, window_bounds = array<i64: 1, 2048>}, {transform_indices = @transform_1, window_bounds = array<i64: 1, 2048>}]} {
    %c0 = arith.constant 0 : index
    %c0_0 = arith.constant 0 : index
    %0 = vector.load %arg1[%c0, %c0_0] : memref<1x2048xf32, #tpu.memory_space<vmem>>, vector<1x2048xf32>
    %cst = arith.constant 0.000000e+00 : f32
    %1 = vector.broadcast %cst : f32 to vector<1x2048xf32>
    %2 = arith.mulf %0, %1 : vector<1x2048xf32>
    %c0_1 = arith.constant 0 : index
    %c0_2 = arith.constant 0 : index
    %3 = vector.load %arg2[%c0_1, %c0_2] : memref<1x2048xf32, #tpu.memory_space<vmem>>, vector<1x2048xf32>
    tpu.vector_store %arg2[%c0_1, %c0_2], %2 {strides = array<i32>} : memref<1x2048xf32, #tpu.memory_space<vmem>>, vector<1x2048xf32>,
    return
  }
  func.func @transform_0(%arg0: i32) -> (i32, i32) {
    %c0_i32 = arith.constant 0 : i32
    %c0_i32_0 = arith.constant 0 : i32
    return %arg0, %c0_i32 : i32, i32
  }
  func.func @transform_1(%arg0: i32) -> (i32, i32) {
    %c0_i32 = arith.constant 0 : i32
    %c0_i32_0 = arith.constant 0 : i32
    return %arg0, %c0_i32 : i32, i32
  }
}

</mosaic_0001>

<bundles_post_ra>
// kernel: tpu_custom_call.1
= control target key start
LH: loop header
LB: loop body
LE: loop exit
PB: predicated region body
PF: predicated region fallthrough
CT: control target
= control target key end

     0   :  { %6 = vsyncpa [#allocation3], 0  ;;  %s118_s0 = inlined_call_operand.hbm [shape: f32[1,2048], index: 0, kind: input, shape index: {}]   ;;  %s119_s1 = inlined_call_operand.hbm [shape: f32[1,2048], index: 1, kind: output, shape index: {}]  }
   0x1   :  { %7 = vsyncpa [#allocation4], 0  ;;  %s13_s8 = sshll.u32 %s118_s0, 4  ;;  %s100_s9 = smov [#allocation2]   ;;  %s14_s8 = int_to_ptr.hbm [resolvable:$true] %s13_s8 }
   0x2   :  { %s15_s10 = sshll.u32 %s100_s9, 4  ;;  %s16_s10 = int_to_ptr.vmem [resolvable:$true] %s15_s10 }
   0x3   :  { %18 = dma.hbm_to_vmem [thread:$0]  %s14_s8, 256, %s16_s10, [#allocation3]  }
   0x4   :  { %96 = dma.done.wait [#allocation3], 256  }
   0x5   :  { %97 = vsyncadd [#allocation3], 4294967040  ;;  %s101_s11 = smov [#allocation5]   ;;  %s36_s15 = sshll.u32 %s119_s1, 4  ;;  %v23_v0 = vld [vmem:[#allocation2] sm:$0xff]  ;;  %v24_v1 = vld [vmem:[#allocation2 + $0x8] sm:$0xff]  ;;  %s37_s15 = int_to_ptr.hbm [resolvable:$true] %s36_s15 }
   0x6   :  { %s34_s12 = sshll.u32 %s101_s11, 4  ;;  %v25_v2 = vmul.f32 0.0, %v23_v0  ;;  %v26_v3 = vmul.f32 0.0, %v24_v1  ;;  %s35_s12 = int_to_ptr.vmem [resolvable:$true] %s34_s12 }
   0x8   :  { %27 = vst [vmem:[#allocation5] sm:$0xff] %v25_v2 }
   0x9   :  { %28 = vst [vmem:[#allocation5 + $0x8] sm:$0xff] %v26_v3 }
   0xa   :  { %39 = dma.vmem_to_hbm [thread:$0]  %s35_s12, 256, %s37_s15, [#allocation4]  }
   0xb   :  { %98 = dma.done.wait [#allocation4], 256  }
   0xc   :  { %99 = vsyncadd [#allocation4], 4294967040 }
   0xd   :  { %44 = vsyncpa [#allocation3], 1 }
   0xe   :  { %45 = vsyncpa [#allocation4], 1 }

</bundles_post_ra>
